<compile_context>
chip_gen: v7x
topology: tpu7x:2x2x1
jax: 0.10.0
libtpu: 0.0.40
codegen_flags: <defaults>
</compile_context>

<pallas_src>
import functools

import jax
import jax.numpy as jnp
from jax.experimental import pallas as pl
from jax.experimental.pallas import tpu as pltpu


def attention_kernel(x_ref, w_ref, b_ref, ctx_ref, wts_ref, *, mixed):
    """Attention over a block of TB batch rows.

    x_ref   : (TB, T, D)  VMEM   lstm_output block (input dtype)
    w_ref   : (1, D)      VMEM   Linear weight, lane-major row
    b_ref   : (1,)        SMEM   Linear bias (f32)
    ctx_ref : (TB, D)     VMEM   output context
    wts_ref : (TB, T)     VMEM   output attention weights (lane-dense)
    """
    x_in = x_ref[...]                                   # (TB, T, D)
    w_in = w_ref[...]                                   # (1, D)

    if mixed:
        # bf16 products on the VPU (v6e/v7x bf16 VALUs); reductions accumulate
        # in f32.  Halves VALU/vreg pressure and avoids a tile-sized f32 copy.
        x = x_in
        w = w_in
    else:
        # Full-f32 path (always used for f32 inputs and on v5e).
        x = x_in.astype(jnp.float32)
        w = w_in.astype(jnp.float32)

    # scores = x . w + b : VPU multiply + XLU lane-reduce (no 1-wide MXU matvec).
    scores = jnp.sum(x * w, axis=-1, dtype=jnp.float32) + b_ref[0]   # (TB, T)

    # Numerically-stable softmax over the sequence axis (T on lanes), f32.
    m = jnp.max(scores, axis=-1, keepdims=True)                      # (TB, 1)
    e = jnp.exp(scores - m)                                          # (TB, T)
    l = jnp.sum(e, axis=-1, keepdims=True)                           # (TB, 1)
    # EUP approximate reciprocal (otherwise-idle slot) + one Newton step to
    # recover ~f32 accuracy; then per-row multiplies instead of divides.
    inv = pl.reciprocal(l, approx=True)
    inv = inv * (2.0 - l * inv)
    weights = e * inv                                                # (TB, T) f32

    # context = sum_t weights * x -> (TB, D)  (sublane reduce over T).
    # TODO(synk): if a bundle dump shows XLU as the binding slot at large T,
    # keep scores/softmax in a (TB, T, 1) layout and relayout only for the
    # final lane-dense weights store (saves one of the two cross-lane moves).
    w_b = weights.astype(x.dtype) if mixed else weights
    context = jnp.sum(w_b[:, :, None] * x, axis=1, dtype=jnp.float32)  # (TB, D)

    wts_ref[...] = weights.astype(wts_ref.dtype)
    ctx_ref[...] = context.astype(ctx_ref.dtype)


def _vmem_budget_bytes():
    """~1/4 of physical VMEM (16 MiB on v7x, 32 MiB on v5e/v6e); safe fallback."""
    try:
        cap = int(pltpu.get_tpu_info().vmem_capacity_bytes)
        if cap > 0:
            return max(8 << 20, min(cap // 4, 48 << 20))
    except Exception:
        pass
    return 16 << 20


def _bf16_compute_ok():
    """bf16 VALUs exist on v6e/v7x; v5e keeps the full-f32 path."""
    try:
        info = pltpu.get_tpu_info()
        name = str(getattr(info, "chip_version", getattr(info, "version", ""))).lower()
        if not name:
            return False
        return "v5" not in name and "5e" not in name
    except Exception:
        return False  # conservative: full-f32 math everywhere


def _per_row_bytes(T, D, itemsize, mixed):
    """VMEM bytes per batch row at one grid step (inputs, f32 temps, outputs)."""
    in_bytes = 2 * T * D * itemsize                 # double-buffered input tile
    f32_tmp = (1 if mixed else 2) * T * D * 4       # in-kernel f32 temporaries
    out_bytes = 2 * (D + T) * itemsize              # double-buffered outputs
    return in_bytes + f32_tmp + out_bytes


def _choose_tb(B, T, D, itemsize, mixed, budget):
    """Batch rows per grid step.

    Either the full (small) batch, or a multiple of 8 that fits the VMEM budget
    and — when B >= 16 — is capped at B//2 so the parallel grid has >= 2 steps
    (keeps both v7x TensorCores busy; no effect on single-TC v5e/v6e).
    """
    rows = max(1, int(budget // _per_row_bytes(T, D, itemsize, mixed)))
    if B < 16:
        if rows >= B:
            return B                      # full-batch block (legal: spans the dim)
        return max(8, 8 * (min(rows, B) // 8))
    tb = min(rows, B // 2)
    # TODO(synk): if tb collapses to 8 and still overflows (very long T on
    # v7x's 64 MiB VMEM), add an "arbitrary" grid axis over T with an online
    # softmax; not needed at these shapes.
    return max(8, 8 * (tb // 8))


def attention_layer(lstm_output, weight, bias):
    """lstm_output: (B, T, 2H), weight: (1, 2H), bias: (1,).

    Returns (context (B, 2H), weights (B, T, 1)) — matching the PyTorch module.
    """
    B, T, D = lstm_output.shape
    dtype = lstm_output.dtype
    itemsize = jnp.dtype(dtype).itemsize

    w_row = weight.reshape(1, D).astype(dtype)        # lane-major (1, D) row
    bias_f32 = bias.reshape(1).astype(jnp.float32)    # scalar in SMEM, f32

    mixed = bool(dtype == jnp.bfloat16 and _bf16_compute_ok())
    budget = _vmem_budget_bytes()
    TB = _choose_tb(B, T, D, itemsize, mixed, budget)

    # Pad the batch so every tile is full (no dropped rows, sublane-dense tiles).
    Bp = ((B + TB - 1) // TB) * TB
    x = lstm_output
    if Bp != B:
        x = jnp.pad(x, ((0, Bp - B), (0, 0), (0, 0)))
    assert Bp % TB == 0

    grid_steps = Bp // TB
    grid = (grid_steps,)

    # Explicit scoped-VMEM limit derived from the real footprint (+ headroom).
    footprint = TB * _per_row_bytes(T, D, itemsize, mixed) + (2 << 20)
    vmem_limit = int(min(48 << 20, max(24 << 20, (footprint * 3) // 2)))

    # Small tiles expose DMA latency; a third input buffer hides it cheaply.
    x_pipeline_mode = pl.Buffered(3) if (TB <= 8 and grid_steps >= 4) else None
    x_spec = pl.BlockSpec((TB, T, D), lambda b: (b, 0, 0),
                          pipeline_mode=x_pipeline_mode)

    cost = pl.CostEstimate(
        flops=int(4 * Bp * T * D),
        transcendentals=int(Bp * T),
        bytes_accessed=int(Bp * T * D * itemsize + Bp * (D + T) * itemsize
                           + D * itemsize + 4),
    )

    ctx, wts = pl.pallas_call(
        functools.partial(attention_kernel, mixed=mixed),
        out_shape=(
            jax.ShapeDtypeStruct((Bp, D), dtype),      # context, stored dense
            jax.ShapeDtypeStruct((Bp, T), dtype),      # weights, lane-dense
        ),
        grid=grid,
        in_specs=[
            x_spec,
            pl.BlockSpec((1, D), lambda b: (0, 0)),
            pl.BlockSpec(memory_space=pltpu.MemorySpace.SMEM),
        ],
        out_specs=(
            pl.BlockSpec((TB, D), lambda b: (b, 0)),
            pl.BlockSpec((TB, T), lambda b: (b, 0)),
        ),
        compiler_params=pltpu.CompilerParams(
            dimension_semantics=("parallel",),
            vmem_limit_bytes=vmem_limit,
        ),
        cost_estimate=cost,
    )(x, w_row, bias_f32)

    if Bp != B:
        ctx = ctx[:B]
        wts = wts[:B]
    return ctx, wts.reshape(B, T, 1)


def attention_layer_ref(lstm_output, weight, bias):
    """Pure-JAX reference matching the PyTorch forward."""
    scores = jnp.einsum("btd,od->bto", lstm_output, weight) + bias  # (B, T, 1)
    weights = jax.nn.softmax(scores, axis=1)
    context = jnp.sum(weights * lstm_output, axis=1)
    return context, weights


if __name__ == "__main__":
    hidden_dim = 16
    B, T, D = 2, 8, hidden_dim * 2   # D = 2*hidden (bi-LSTM output feature dim)

    key = jax.random.PRNGKey(0)
    k_x, k_w, k_b = jax.random.split(key, 3)

    # Deterministic params mimicking nn.Linear default init: U(-1/sqrt(in), 1/sqrt(in))
    bound = 1.0 / jnp.sqrt(jnp.float32(D))
    weight = jax.random.uniform(k_w, (1, D), jnp.float32, -bound, bound)  # (out=1, in=2H)
    bias = jax.random.uniform(k_b, (1,), jnp.float32, -bound, bound)

    lstm_output = jax.random.normal(k_x, (B, T, D), jnp.float32)

    context, weights = attention_layer(lstm_output, weight, bias)
    context, weights = jax.block_until_ready((context, weights))

    ctx_ref, wts_ref = attention_layer_ref(lstm_output, weight, bias)
    assert context.shape == (B, D) and weights.shape == (B, T, 1)
    assert jnp.allclose(context, ctx_ref, atol=1e-5, rtol=1e-5)
    assert jnp.allclose(weights, wts_ref, atol=1e-5, rtol=1e-5)

    print("KERNEL_OK")
</pallas_src>

<mosaic_0001>
module attributes {stable_mosaic.version = 11 : i64} {
  func.func @attention_kernel(%arg0: i32, %arg1: memref<2x8x32xf32, #tpu.memory_space<vmem>>, %arg2: memref<1x32xf32, #tpu.memory_space<vmem>>, %arg3: memref<1xf32, #tpu.memory_space<smem>>, %arg4: memref<2x32xf32, #tpu.memory_space<vmem>>, %arg5: memref<2x8xf32, #tpu.memory_space<vmem>>) attributes {dimension_semantics = [#tpu.dimension_semantics<parallel>], iteration_bounds = array<i64: 1>, scalar_prefetch = 0 : i64, scratch_operands = 0 : i64, tpu.core_type = #tpu.core_type<tc>, window_params = [{transform_indices = @transform_0, window_bounds = array<i64: 2, 8, 32>}, {pipeline_mode = #tpu.pipeline_mode<synchronous>, transform_indices = @transform_1, window_bounds = array<i64: 1, 32>}, {transform_indices = @transform_2, window_bounds = array<i64: 1>}, {transform_indices = @transform_3, window_bounds = array<i64: 2, 32>}, {transform_indices = @transform_4, window_bounds = array<i64: 2, 8>}]} {
    %c0 = arith.constant 0 : index
    %c0_0 = arith.constant 0 : index
    %c0_1 = arith.constant 0 : index
    %0 = vector.load %arg1[%c0, %c0_0, %c0_1] : memref<2x8x32xf32, #tpu.memory_space<vmem>>, vector<2x8x32xf32>
    %c0_2 = arith.constant 0 : index
    %c0_3 = arith.constant 0 : index
    %1 = vector.load %arg2[%c0_2, %c0_3] : memref<1x32xf32, #tpu.memory_space<vmem>>, vector<1x32xf32>
    %2 = vector.shape_cast %1 : vector<1x32xf32> to vector<1x1x32xf32>
    %3 = vector.broadcast %2 : vector<1x1x32xf32> to vector<2x8x32xf32>
    %4 = arith.mulf %0, %3 : vector<2x8x32xf32>
    %cst = arith.constant dense<0.000000e+00> : vector<2x8xf32>
    %5 = vector.multi_reduction <add>, %4, %cst [2] : vector<2x8x32xf32> to vector<2x8xf32>
    %c0_4 = arith.constant 0 : index
    %6 = memref.load %arg3[%c0_4] : memref<1xf32, #tpu.memory_space<smem>>
    %7 = vector.broadcast %6 : f32 to vector<2x8xf32>
    %8 = arith.addf %5, %7 : vector<2x8xf32>
    %cst_5 = arith.constant dense<0xFF800000> : vector<2xf32>
    %9 = vector.multi_reduction <maximumf>, %8, %cst_5 [1] : vector<2x8xf32> to vector<2xf32>
    %10 = vector.shape_cast %9 : vector<2xf32> to vector<2x1xf32>
    %11 = vector.broadcast %10 : vector<2x1xf32> to vector<2x8xf32>
    %12 = arith.subf %8, %11 : vector<2x8xf32>
    %13 = math.exp %12 : vector<2x8xf32>
    %cst_6 = arith.constant dense<0.000000e+00> : vector<2xf32>
    %14 = vector.multi_reduction <add>, %13, %cst_6 [1] : vector<2x8xf32> to vector<2xf32>
    %15 = vector.shape_cast %14 : vector<2xf32> to vector<2x1xf32>
    %16 = tpu.reciprocal %15 {approx = true} : vector<2x1xf32> -> vector<2x1xf32>
    %17 = arith.mulf %15, %16 : vector<2x1xf32>
    %cst_7 = arith.constant 2.000000e+00 : f32
    %18 = vector.broadcast %cst_7 : f32 to vector<2x1xf32>
    %19 = arith.subf %18, %17 : vector<2x1xf32>
    %20 = arith.mulf %16, %19 : vector<2x1xf32>
    %21 = vector.broadcast %20 : vector<2x1xf32> to vector<2x8xf32>
    %22 = arith.mulf %13, %21 : vector<2x8xf32>
    %23 = vector.shape_cast %22 : vector<2x8xf32> to vector<2x8x1xf32>
    %24 = vector.broadcast %23 : vector<2x8x1xf32> to vector<2x8x32xf32>
    %25 = arith.mulf %24, %0 : vector<2x8x32xf32>
    %cst_8 = arith.constant dense<0.000000e+00> : vector<2x32xf32>
    %26 = vector.multi_reduction <add>, %25, %cst_8 [1] : vector<2x8x32xf32> to vector<2x32xf32>
    %c0_9 = arith.constant 0 : index
    %c0_10 = arith.constant 0 : index
    %27 = vector.load %arg5[%c0_9, %c0_10] : memref<2x8xf32, #tpu.memory_space<vmem>>, vector<2x8xf32>
    tpu.vector_store %arg5[%c0_9, %c0_10], %22 {strides = array<i32>} : memref<2x8xf32, #tpu.memory_space<vmem>>, vector<2x8xf32>,
    %c0_11 = arith.constant 0 : index
    %c0_12 = arith.constant 0 : index
    %28 = vector.load %arg4[%c0_11, %c0_12] : memref<2x32xf32, #tpu.memory_space<vmem>>, vector<2x32xf32>
    tpu.vector_store %arg4[%c0_11, %c0_12], %26 {strides = array<i32>} : memref<2x32xf32, #tpu.memory_space<vmem>>, vector<2x32xf32>,
    return
  }
  func.func @transform_0(%arg0: i32) -> (i32, i32, i32) {
    %c0_i32 = arith.constant 0 : i32
    %c0_i32_0 = arith.constant 0 : i32
    %c0_i32_1 = arith.constant 0 : i32
    return %arg0, %c0_i32, %c0_i32_0 : i32, i32, i32
  }
  func.func @transform_1(%arg0: i32) -> (i32, i32) {
    %c0_i32 = arith.constant 0 : i32
    %c0_i32_0 = arith.constant 0 : i32
    %c0_i32_1 = arith.constant 0 : i32
    return %c0_i32, %c0_i32_0 : i32, i32
  }
  func.func @transform_2(%arg0: i32) -> i32 {
    %c0_i32 = arith.constant 0 : i32
    %c0_i32_0 = arith.constant 0 : i32
    return %c0_i32 : i32
  }
  func.func @transform_3(%arg0: i32) -> (i32, i32) {
    %c0_i32 = arith.constant 0 : i32
    %c0_i32_0 = arith.constant 0 : i32
    return %arg0, %c0_i32 : i32, i32
  }
  func.func @transform_4(%arg0: i32) -> (i32, i32) {
    %c0_i32 = arith.constant 0 : i32
    %c0_i32_0 = arith.constant 0 : i32
    return %arg0, %c0_i32 : i32, i32
  }
}

</mosaic_0001>

<bundles_post_ra>
// kernel: tpu_custom_call.1
= control target key start
LH: loop header
LB: loop body
LE: loop exit
PB: predicated region body
PF: predicated region fallthrough
CT: control target
= control target key end

     0   :  { %11 = vsyncpa [#allocation4], 0  ;;  %s388_s0 = inlined_call_operand.hbm [shape: f32[2,8,32], index: 0, kind: input, shape index: {}]   ;;  %s389_s1 = inlined_call_operand.vmem [shape: f32[1,32], index: 1, kind: input, shape index: {}]   ;;  %s390_s2 = inlined_call_operand.<no memory space> [shape: f32[1], index: 2, kind: input, shape index: {}]   ;;  %s391_s3 = inlined_call_operand.hbm [shape: f32[2,32], index: 3, kind: output, shape index: {0}]   ;;  %s392_s4 = inlined_call_operand.hbm [shape: f32[2,8], index: 4, kind: output, shape index: {1}]  }
   0x1   :  { %12 = vsyncpa [#allocation5], 0 }
   0x2   :  { %13 = vsyncpa [#allocation8], 0  ;;  %s288_s15 = smov [#allocation3]   ;;  %s216_s19 = scalar_lea.hbm %s388_s0, 256 }
   0x3   :  { %s19_s16 = sshll.u32 %s288_s15, 4  ;;  %p217_p0 = scmp.ne.s32.totalorder %s388_s0, %s216_s19  ;;  %s20_s16 = int_to_ptr.vmem [resolvable:$true] %s19_s16 }
   0x4   :  { %p220_p1 = scmp.lt.u32.totalorder %s216_s19, %s388_s0 }
   0x6   :  { %p222_p2 = pnand %p220_p1, %p217_p0 }
   0x8   :  { %225 = shalt.err (!%p222_p2)
}
   0x9   :  { %s226_s24 = scalar_lea.vmem %s20_s16, 256  ;;  %p231_p4 = scmp.lt.s32.totalorder %s20_s16, %s20_s16 }
   0xa   :  { %p227_p3 = scmp.ne.s32.totalorder %s20_s16, %s226_s24  ;;  %p232_p5 = scmp.lt.s32.totalorder %s226_s24, %s226_s24 }
   0xc   :  { %p233_p6 = por %p232_p5, %p231_p4 }
   0xe   :  { %p234_p7 = pnand %p233_p6, %p227_p3 }
  0x10   :  { %237 = shalt.err (!%p234_p7)
}
  0x11   :  { %s289_s25 = smov 128   ;;  %s290_s26 = smov 8  }
  0x12   :  { %25 = dma.hbm_to_vmem [thread:$0]  %s388_s0, 256, %s20_s16, [#allocation4], %s289_s25, %s289_s25, %s290_s26  }
  0x13   :  { %282 = dma.done.wait [#allocation4], 256  }
  0x14   :  { %283 = vsyncadd [#allocation4], 4294967040  ;;  %v331_v0 = vld [vmem:[#allocation3] sm:$0xff]  ;;  %vm44_vm0 = vcmask 261120   ;;  %v336_v2 = vld [vmem:[#allocation3 + $0x8] sm:$0xff]  ;;  %v57_v7 = vlaneseq  ;;  %v52_v10 = vstv %s390_s2  ;;  %vm67_vm1 = vcmask 1041409  }
  0x15   :  { %v201_v1 = vld [vmem:[%s389_s1] ss:$0 sm:$0xff]  ;;  %vm70_vm2 = vcmask 58368   ;;  %v291_v20 = vmov 0   ;;  %s292_s1 = smov [#allocation7]  }
  0x16   :  { %v42_v3 = vmul.f32 %v201_v1, %v331_v0  ;;  %v43_v4 = vmul.f32 %v201_v1, %v336_v2  ;;  %v58_v8 = vand.u32 127, %v57_v7  ;;  %v60_v9 = vshrl.u32 %v57_v7, 7  ;;  %209 = vset.pattern.permute.xlu0 %v291_v20  ;;  %208 = vset.pattern.permute.xlu1 %v291_v20  ;;  %s188_s2 = sshll.u32 %s292_s1, 4  ;;  %s189_s2 = int_to_ptr.vmem [resolvable:$true] %s188_s2 }
  0x17   :  { %s238_s6 = scalar_lea.vmem %s189_s2, 32  ;;  %p243_p9 = scmp.lt.s32.totalorder %s189_s2, %s189_s2 }
  0x18   :  { %v45_v5 = vsel %vm44_vm0, %v42_v3, 0.0  ;;  %v48_v6 = vsel %vm44_vm0, %v43_v4, 0.0  ;;  %v345_v12 = vsub.s32 %v58_v8, %v60_v9  ;;  %v77_v21 = vsub.s32 0, %v60_v9  ;;  %p239_p8 = scmp.ne.s32.totalorder %s189_s2, %s238_s6  ;;  %p244_p10 = scmp.lt.s32.totalorder %s238_s6, %s238_s6 }
  0x19   :  { %46 = vadd.xlane.f32.xlu0 %v45_v5  ;;  %v81_v22 = vsub.s32 1, %v60_v9 }
  0x1a   :  { %p245_p11 = por %p244_p10, %p243_p9 }
  0x1c   :  { %p246_p12 = pnand %p245_p11, %p239_p8 }
  0x1d   :  { %49 = vadd.xlane.f32.xlu0 %v48_v6 }
  0xa6   :  { %v47_v11 = vpop.xlane.xlu0 %46 }
  0xa7   :  { %v53_v13 = vadd.f32 %v52_v10, %v47_v11 }
  0xa9   :  { %v62_v16 = vrot.slane %v53_v13, %v345_v12 }
  0xaa   :  { %v50_v14 = vpop.xlane.xlu0 %49 }
  0xab   :  { %v54_v15 = vadd.f32 %v52_v10, %v50_v14 }
  0xad   :  { %v66_v17 = vrot.slane %v54_v15, %v345_v12 }
  0xaf   :  { %v68_v18 = vsel %vm67_vm1, %v66_v17, %v62_v16 }
  0xb0   :  { %v71_v19 = vsel %vm70_vm2, %v68_v18, -inf }
  0xb1   :  { %72 = vmax.xlane.f32.xlu1 %v71_v19 }
 0x13e   :  { %v73_v23 = vpop.xlane.xlu1 %72 }
 0x13f   :  { %v78_v24 = vrot.slane %v73_v23, %v77_v21  ;;  %v82_v25 = vrot.slane %v73_v23, %v81_v22 }
 0x141   :  { %v85_v26 = vsub.f32 %v53_v13, %v78_v24  ;;  %v86_v27 = vsub.f32 %v54_v15, %v82_v25 }
 0x143   :  { %v87_v28 = vmul.f32 1.442695, %v85_v26  ;;  %v89_v29 = vmul.f32 1.442695, %v86_v27 }
 0x145   :  { %210 = vpow2.f32 %v87_v28 }
 0x146   :  { %212 = vpow2.f32 %v89_v29 }
 0x14f   :  { %v211_v30 = vpop.eup %210 }
 0x150   :  { %v213_v31 = vpop.eup %212  ;;  %94 = vperm.xlu1 %208, %v211_v30  }
 0x151   :  { %97 = vperm.xlu0 %209, %v213_v31  }
 0x1cf   :  { %v95_v32 = vpop.permute.xlu1 %94 }
 0x1d0   :  { %v98_v33 = vpop.permute.xlu0 %97  ;;  %v102_v34 = vrot.slane %v95_v32, %v345_v12 }
 0x1d1   :  { %v106_v35 = vrot.slane %v98_v33, %v345_v12 }
 0x1d3   :  { %v107_v36 = vsel %vm67_vm1, %v106_v35, %v102_v34 }
 0x1d4   :  { %v109_v37 = vsel %vm70_vm2, %v107_v36, 0.0 }
 0x1d5   :  { %110 = vadd.xlane.f32.xlu1 %v109_v37 }
 0x262   :  { %v111_v38 = vpop.xlane.xlu1 %110 }
 0x263   :  { %214 = vrcp.f32 %v111_v38 }
 0x26d   :  { %v215_v39 = vpop.eup %214 }
 0x26e   :  { %v113_v40 = vmul.f32 %v215_v39, %v111_v38 }
 0x270   :  { %v114_v41 = vsub.f32 2.0, %v113_v40 }
 0x272   :  { %v115_v42 = vmul.f32 %v215_v39, %v114_v41 }
 0x274   :  { %v120_v43 = vrot.slane %v115_v42, %v77_v21  ;;  %v124_v44 = vrot.slane %v115_v42, %v81_v22 }
 0x276   :  { %v127_v45 = vmul.f32 %v211_v30, %v120_v43  ;;  %v128_v46 = vmul.f32 %v213_v31, %v124_v44 }
 0x278   :  { %131 = vperm.xlu0 %209, %v127_v45  }
 0x27c   :  { %136 = vperm.xlu0 %209, %v128_v46  }
 0x2f7   :  { %v132_v47 = vpop.permute.xlu0 %131 }
 0x2f8   :  { %v139_v48 = vmul.f32 %v132_v47, %v331_v0  ;;  %v158_v52 = vrot.slane %v132_v47, %v345_v12 }
 0x2fa   :  { %v141_v49 = vsel %vm44_vm0, %v139_v48, 0.0 }
 0x2fb   :  { %v142_v50 = vrot.slane %v141_v49, 4  ;;  %v137_v51 = vpop.permute.xlu0 %136 }
 0x2fc   :  { %v140_v53 = vmul.f32 %v137_v51, %v336_v2  ;;  %v162_v54 = vrot.slane %v137_v51, %v345_v12 }
 0x2fd   :  { %v143_v55 = vadd.f32 %v142_v50, %v141_v49 }
 0x2fe   :  { %v148_v56 = vsel %vm44_vm0, %v140_v53, 0.0  ;;  %v163_v57 = vsel %vm67_vm1, %v162_v54, %v158_v52 }
 0x2ff   :  { %v144_v58 = vrot.slane %v143_v55, 2  ;;  %v149_v59 = vrot.slane %v148_v56, 4  ;;  %165 = vst.msk [vmem:[#allocation7] sm:$0x3] %vm70_vm2, %v163_v57 }
 0x300   :  { %249 = shalt.err (!%p246_p12)
}
 0x301   :  { %s250_s9 = scalar_lea.hbm %s392_s4, 32 }
 0x302   :  { %p251_p13 = scmp.ne.s32.totalorder %s392_s4, %s250_s9  ;;  %p254_p0 = scmp.lt.u32.totalorder %s250_s9, %s392_s4 }
 0x304   :  { %p256_p1 = pnand %p254_p0, %p251_p13 }
 0x306   :  { %259 = shalt.err (!%p256_p1)
}
 0x307   :  { %191 = dma.vmem_to_hbm [thread:$0]  %s189_s2, 32, %s392_s4, [#allocation8]   ;;  %v145_v60 = vadd.f32 %v144_v58, %v143_v55  ;;  %v150_v61 = vadd.f32 %v149_v59, %v148_v56  ;;  %vm170_vm3 = vcmask 254976  }
 0x308   :  { %s293_s16 = smov [#allocation6]  }
 0x309   :  { %v151_v62 = vrot.slane %v150_v61, 2  ;;  %v146_v63 = vrot.slane %v145_v60, 1  ;;  %s178_s17 = sshll.u32 %s293_s16, 4  ;;  %s179_s17 = int_to_ptr.vmem [resolvable:$true] %s178_s17 }
 0x30a   :  { %s260_s18 = scalar_lea.vmem %s179_s17, 32  ;;  %p265_p3 = scmp.lt.s32.totalorder %s179_s17, %s179_s17 }
 0x30b   :  { %v152_v0 = vadd.f32 %v151_v62, %v150_v61  ;;  %v147_v3 = vadd.f32 %v146_v63, %v145_v60  ;;  %p261_p2 = scmp.ne.s32.totalorder %s179_s17, %s260_s18  ;;  %p266_p4 = scmp.lt.s32.totalorder %s260_s18, %s260_s18 }
 0x30d   :  { %v153_v1 = vrot.slane %v152_v0, 1  ;;  %p267_p5 = por %p266_p4, %p265_p3 }
 0x30f   :  { %v154_v2 = vadd.f32 %v153_v1, %v152_v0  ;;  %p268_p6 = pnand %p267_p5, %p261_p2 }
 0x311   :  { %v168_v4 = vsel %vm67_vm1, %v154_v2, %v147_v3 }
 0x312   :  { %171 = vst.msk [vmem:[#allocation6] sm:$0x3] %vm170_vm3, %v168_v4 }
 0x313   :  { %271 = shalt.err (!%p268_p6)
}
 0x314   :  { %s272_s20 = scalar_lea.hbm %s391_s3, 32 }
 0x315   :  { %p273_p7 = scmp.ne.s32.totalorder %s391_s3, %s272_s20  ;;  %p276_p8 = scmp.lt.u32.totalorder %s272_s20, %s391_s3 }
 0x317   :  { %p278_p9 = pnand %p276_p8, %p273_p7 }
 0x319   :  { %281 = shalt.err (!%p278_p9)
}
 0x31a   :  { %181 = dma.vmem_to_hbm [thread:$0]  %s179_s17, 32, %s391_s3, [#allocation5]  }
 0x31b   :  { %284 = dma.done.wait [#allocation5], 32  }
 0x31c   :  { %285 = vsyncadd [#allocation5], 4294967264 }
 0x31d   :  { %286 = dma.done.wait [#allocation8], 32  }
 0x31e   :  { %287 = vsyncadd [#allocation8], 4294967264 }
 0x31f   :  { %198 = vsyncpa [#allocation4], 1 }
 0x320   :  { %199 = vsyncpa [#allocation5], 1 }
 0x321   :  { %200 = vsyncpa [#allocation8], 1 }

</bundles_post_ra>
